<compile_context>
chip_gen: v7x
topology: tpu7x:2x2x1
jax: 0.10.0
libtpu: 0.0.40
codegen_flags: <defaults>
</compile_context>

<pallas_src>
import functools
import math

import jax
import jax.numpy as jnp
from jax.experimental import pallas as pl
from jax.experimental.pallas import tpu as pltpu

BN_EPS = 1e-5
VMEM_LIMIT_BYTES = 32 * 1024 * 1024  # safe on v5e/v6e (128 MiB) and v7x (64 MiB)


# ---------------------------------------------------------------------------
# Pass 1: full-batch BatchNorm statistics, single pass (sum & sum-of-squares),
# finalized into per-feature scale / shift rows.
# ---------------------------------------------------------------------------
def bn_stats_kernel(obs_ref, gamma_ref, beta_ref,
                    mean_ref, var_ref, scale_ref, shift_ref, *, inv_n):
    i = pl.program_id(0)
    x = obs_ref[...].astype(jnp.float32)                 # (tile_b, obs_dim)

    @pl.when(i == 0)
    def _init():
        mean_ref[...] = jnp.zeros_like(mean_ref)
        var_ref[...] = jnp.zeros_like(var_ref)

    # Accumulate sum and sum-of-squares directly in the resident output rows.
    mean_ref[...] += jnp.sum(x, axis=0, keepdims=True)
    var_ref[...] += jnp.sum(x * x, axis=0, keepdims=True)

    @pl.when(i == pl.num_programs(0) - 1)
    def _finalize():
        mu = mean_ref[...] * inv_n                       # E[x]   (true batch size)
        ex2 = var_ref[...] * inv_n                       # E[x^2]
        var = jnp.maximum(ex2 - mu * mu, 0.0)            # biased var (training BN)
        scale = gamma_ref[...] * jax.lax.rsqrt(var + BN_EPS)
        mean_ref[...] = mu
        var_ref[...] = var
        scale_ref[...] = scale
        shift_ref[...] = beta_ref[...] - mu * scale


# ---------------------------------------------------------------------------
# Pass 2: fused BN-apply + fc1 + fc2(concat) + fc3 over one batch tile.
# ---------------------------------------------------------------------------
def qnet_fwd_kernel(obs_ref, act_ref, scale_ref, shift_ref,
                    w1_ref, b1_ref, w2h_ref, w2a_ref, b2_ref,
                    w3_row_ref, b3_ref, out_ref, *, mxu_dtype):
    # BatchNorm apply as a single scale/shift FMA (stats precomputed in pass 1).
    x = obs_ref[...].astype(jnp.float32) * scale_ref[...] + shift_ref[...]

    # fc1 + relu (MXU, f32 accumulation).
    h1 = jnp.dot(x.astype(mxu_dtype), w1_ref[...],
                 preferred_element_type=jnp.float32) + b1_ref[...]
    h1 = jnp.maximum(h1, 0.0)

    # fc2 over concat([h1, act]) + relu, via split weights.
    h2 = (jnp.dot(h1.astype(mxu_dtype), w2h_ref[...],
                  preferred_element_type=jnp.float32)
          + jnp.dot(act_ref[...].astype(mxu_dtype), w2a_ref[...],
                    preferred_element_type=jnp.float32)
          + b2_ref[...])
    h2 = jnp.maximum(h2, 0.0)

    # fc3 (out_features == 1): VPU multiply + lane reduction, no N=1 MXU matmul.
    q = jnp.sum(h2 * w3_row_ref[...], axis=-1, keepdims=True) + b3_ref[...]
    out_ref[...] = q.astype(out_ref.dtype)


# ---------------------------------------------------------------------------
# Wrapper
# ---------------------------------------------------------------------------
def qnetwork_forward(obs, act, params, *, tile_b=256, mxu_dtype=jnp.float32,
                     return_batch_stats=False):
    """Forward pass of the centralized critic.

    obs: (B, obs_dim) f32, act: (B, act_dim) f32 -> q: (B, 1) f32.
    """
    B, obs_dim = obs.shape
    act_dim = act.shape[1]
    hidden = params["w1"].shape[1]
    assert tile_b % 8 == 0, "batch tile must be a multiple of 8 (f32 sublanes)"

    # Pad the batch to a multiple of the tile size.  Zero rows contribute zero
    # to sum / sum-of-squares, and the true 1/B is used for the BN statistics,
    # so padding does not change the math; padded q rows are sliced off.
    b_pad = ((B + tile_b - 1) // tile_b) * tile_b
    if b_pad != B:
        obs_p = jnp.pad(obs, ((0, b_pad - B), (0, 0)))
        act_p = jnp.pad(act, ((0, b_pad - B), (0, 0)))
    else:
        obs_p, act_p = obs, act
    num_tiles = b_pad // tile_b

    tile = lambda i: (i, 0)   # batch-tiled
    keep = lambda i: (0, 0)   # resident across the whole grid

    # --- pass 1: full-batch BN stats (reduction axis -> "arbitrary") ---------
    stats_shape = [jax.ShapeDtypeStruct((1, obs_dim), jnp.float32)] * 4
    mean, var, scale, shift = pl.pallas_call(
        functools.partial(bn_stats_kernel, inv_n=1.0 / B),
        out_shape=stats_shape,
        grid=(num_tiles,),
        in_specs=[pl.BlockSpec((tile_b, obs_dim), tile),
                  pl.BlockSpec((1, obs_dim), keep),
                  pl.BlockSpec((1, obs_dim), keep)],
        out_specs=[pl.BlockSpec((1, obs_dim), keep)] * 4,
        compiler_params=pltpu.CompilerParams(
            dimension_semantics=("arbitrary",),
            vmem_limit_bytes=VMEM_LIMIT_BYTES),
    )(obs_p, params["gamma"], params["beta"])

    # --- pass 2: streaming forward (independent tiles -> "parallel") ---------
    # Matmul weights live in HBM/VMEM in the MXU dtype (halves DMA bytes for
    # bf16); BN rows / biases / fc3 row stay f32 for the VPU work.
    w1 = params["w1"].astype(mxu_dtype)
    w2h = params["w2h"].astype(mxu_dtype)
    w2a = params["w2a"].astype(mxu_dtype)

    q = pl.pallas_call(
        functools.partial(qnet_fwd_kernel, mxu_dtype=mxu_dtype),
        out_shape=jax.ShapeDtypeStruct((b_pad, 1), jnp.float32),
        grid=(num_tiles,),
        in_specs=[pl.BlockSpec((tile_b, obs_dim), tile),   # obs  (streamed)
                  pl.BlockSpec((tile_b, act_dim), tile),   # act  (streamed)
                  pl.BlockSpec((1, obs_dim), keep),        # BN scale (resident)
                  pl.BlockSpec((1, obs_dim), keep),        # BN shift (resident)
                  pl.BlockSpec((obs_dim, hidden), keep),   # w1
                  pl.BlockSpec((1, hidden), keep),         # b1
                  pl.BlockSpec((hidden, hidden), keep),    # w2h
                  pl.BlockSpec((act_dim, hidden), keep),   # w2a
                  pl.BlockSpec((1, hidden), keep),         # b2
                  pl.BlockSpec((1, hidden), keep),         # w3 row
                  pl.BlockSpec((1, 1), keep)],             # b3
        out_specs=pl.BlockSpec((tile_b, 1), tile),
        compiler_params=pltpu.CompilerParams(
            dimension_semantics=("parallel",),
            vmem_limit_bytes=VMEM_LIMIT_BYTES),
    )(obs_p, act_p, scale, shift,
      w1, params["b1"], w2h, w2a, params["b2"],
      params["w3_row"], params["b3"])

    q = q[:B]
    if return_batch_stats:
        # TODO(synk): PyTorch BatchNorm1d also updates running_mean/running_var
        # (EMA, with unbiased var = var * B/(B-1)); that module-state mutation is
        # host-side and not part of this kernel -- the batch stats are exposed
        # here so the caller can apply it.
        return q, {"batch_mean": mean, "batch_var": var}
    return q


def init_params(key, obs_dim, act_dim, hidden=128):
    """Deterministic init mirroring the PyTorch module.

    lecunishUniformInitializer uses weight.size()[0] == out_features, so
    lim = 1/sqrt(out_features / 2) = 0.125 for fc1/fc2; fc3 weight uses +-0.003.
    Biases keep PyTorch's default Linear init U(-1/sqrt(fan_in), 1/sqrt(fan_in)).
    BatchNorm: gamma = 1, beta = 0.  Linear weights are stored transposed as
    (in_features, out_features); fc2's weight is split into hidden/action parts.
    """
    k = jax.random.split(key, 7)
    lim12 = 1.0 / math.sqrt(hidden / 2.0)

    def u(kk, shape, lim):
        return jax.random.uniform(kk, shape, jnp.float32, -lim, lim)

    return {
        "gamma": jnp.ones((1, obs_dim), jnp.float32),
        "beta": jnp.zeros((1, obs_dim), jnp.float32),
        "w1": u(k[0], (obs_dim, hidden), lim12),
        "b1": u(k[1], (1, hidden), 1.0 / math.sqrt(obs_dim)),
        "w2h": u(k[2], (hidden, hidden), lim12),
        "w2a": u(k[3], (act_dim, hidden), lim12),
        "b2": u(k[4], (1, hidden), 1.0 / math.sqrt(hidden + act_dim)),
        "w3_row": u(k[5], (1, hidden), 0.003),
        "b3": u(k[6], (1, 1), 1.0 / math.sqrt(hidden)),
    }


if __name__ == "__main__":
    # Tennis-like shapes: 2 agents x 24-dim obs, 2 agents x 2-dim action.
    # batch=500 is not a multiple of the tile -> also exercises the padding path.
    batch, obs_dim, act_dim = 500, 48, 4

    key = jax.random.PRNGKey(0)
    k_obs, k_act, k_par = jax.random.split(key, 3)
    obs = jax.random.normal(k_obs, (batch, obs_dim), jnp.float32)
    act = jax.random.uniform(k_act, (batch, act_dim), jnp.float32, -1.0, 1.0)
    params = init_params(k_par, obs_dim, act_dim)

    # f32 MXU path (exactness check).
    q = qnetwork_forward(obs, act, params, tile_b=128)
    jax.block_until_ready(q)
    assert q.shape == (batch, 1) and q.dtype == jnp.float32

    # Pure-JAX reference (same math as the PyTorch module, training-mode BN).
    mean = jnp.mean(obs, axis=0, keepdims=True)
    var = jnp.mean((obs - mean) ** 2, axis=0, keepdims=True)
    h = params["gamma"] * (obs - mean) / jnp.sqrt(var + BN_EPS) + params["beta"]
    h1 = jnp.maximum(h @ params["w1"] + params["b1"], 0.0)
    h2 = jnp.maximum(h1 @ params["w2h"] + act @ params["w2a"] + params["b2"], 0.0)
    q_ref = h2 @ params["w3_row"].T + params["b3"]

    err_f32 = float(jnp.max(jnp.abs(q - q_ref)))
    assert jnp.allclose(q, q_ref, atol=1e-4, rtol=1e-4), err_f32

    # bf16 MXU path (v6e/v7x-friendly); BN / biases / relu / fc3 stay in f32.
    q_bf16 = qnetwork_forward(obs, act, params, tile_b=128,
                              mxu_dtype=jnp.bfloat16)
    jax.block_until_ready(q_bf16)
    err_bf16 = float(jnp.max(jnp.abs(q_bf16 - q_ref)))
    assert jnp.allclose(q_bf16, q_ref, atol=5e-3, rtol=5e-2), err_bf16

    print("KERNEL_OK")
</pallas_src>

<mosaic_0001>
module attributes {stable_mosaic.version = 11 : i64} {
  func.func @bn_stats_kernel(%arg0: i32, %arg1: memref<128x48xf32, #tpu.memory_space<vmem>>, %arg2: memref<1x48xf32, #tpu.memory_space<vmem>>, %arg3: memref<1x48xf32, #tpu.memory_space<vmem>>, %arg4: memref<1x48xf32, #tpu.memory_space<vmem>>, %arg5: memref<1x48xf32, #tpu.memory_space<vmem>>, %arg6: memref<1x48xf32, #tpu.memory_space<vmem>>, %arg7: memref<1x48xf32, #tpu.memory_space<vmem>>) attributes {dimension_semantics = [#tpu.dimension_semantics<arbitrary>], iteration_bounds = array<i64: 4>, scalar_prefetch = 0 : i64, scratch_operands = 0 : i64, tpu.core_type = #tpu.core_type<tc>, window_params = [{transform_indices = @transform_0, window_bounds = array<i64: 128, 48>}, {pipeline_mode = #tpu.pipeline_mode<synchronous>, transform_indices = @transform_1, window_bounds = array<i64: 1, 48>}, {pipeline_mode = #tpu.pipeline_mode<synchronous>, transform_indices = @transform_2, window_bounds = array<i64: 1, 48>}, {pipeline_mode = #tpu.pipeline_mode<synchronous>, transform_indices = @transform_3, window_bounds = array<i64: 1, 48>}, {pipeline_mode = #tpu.pipeline_mode<synchronous>, transform_indices = @transform_4, window_bounds = array<i64: 1, 48>}, {pipeline_mode = #tpu.pipeline_mode<synchronous>, transform_indices = @transform_5, window_bounds = array<i64: 1, 48>}, {pipeline_mode = #tpu.pipeline_mode<synchronous>, transform_indices = @transform_6, window_bounds = array<i64: 1, 48>}]} {
    %c0 = arith.constant 0 : index
    %c0_0 = arith.constant 0 : index
    %0 = vector.load %arg1[%c0, %c0_0] : memref<128x48xf32, #tpu.memory_space<vmem>>, vector<128x48xf32>
    %c0_i32 = arith.constant 0 : i32
    %1 = arith.cmpi eq, %arg0, %c0_i32 : i32
    %2 = arith.extui %1 : i1 to i32
    %c0_i32_1 = arith.constant 0 : i32
    %3 = arith.cmpi ne, %2, %c0_i32_1 : i32
    scf.if %3 {
      %cst_12 = arith.constant 0.000000e+00 : f32
      %18 = vector.broadcast %cst_12 : f32 to vector<1x48xf32>
      %c0_13 = arith.constant 0 : index
      %c0_14 = arith.constant 0 : index
      %19 = vector.load %arg4[%c0_13, %c0_14] : memref<1x48xf32, #tpu.memory_space<vmem>>, vector<1x48xf32>
      tpu.vector_store %arg4[%c0_13, %c0_14], %18 {strides = array<i32>} : memref<1x48xf32, #tpu.memory_space<vmem>>, vector<1x48xf32>,
      %cst_15 = arith.constant 0.000000e+00 : f32
      %20 = vector.broadcast %cst_15 : f32 to vector<1x48xf32>
      %c0_16 = arith.constant 0 : index
      %c0_17 = arith.constant 0 : index
      %21 = vector.load %arg5[%c0_16, %c0_17] : memref<1x48xf32, #tpu.memory_space<vmem>>, vector<1x48xf32>
      tpu.vector_store %arg5[%c0_16, %c0_17], %20 {strides = array<i32>} : memref<1x48xf32, #tpu.memory_space<vmem>>, vector<1x48xf32>,
    } else {
    }
    %c0_2 = arith.constant 0 : index
    %c0_3 = arith.constant 0 : index
    %4 = vector.load %arg4[%c0_2, %c0_3] : memref<1x48xf32, #tpu.memory_space<vmem>>, vector<1x48xf32>
    %cst = arith.constant dense<0.000000e+00> : vector<48xf32>
    %5 = vector.multi_reduction <add>, %0, %cst [0] : vector<128x48xf32> to vector<48xf32>
    %6 = vector.shape_cast %5 : vector<48xf32> to vector<1x48xf32>
    %7 = arith.addf %4, %6 : vector<1x48xf32>
    %c0_4 = arith.constant 0 : index
    %c0_5 = arith.constant 0 : index
    %8 = vector.load %arg4[%c0_4, %c0_5] : memref<1x48xf32, #tpu.memory_space<vmem>>, vector<1x48xf32>
    tpu.vector_store %arg4[%c0_4, %c0_5], %7 {strides = array<i32>} : memref<1x48xf32, #tpu.memory_space<vmem>>, vector<1x48xf32>,
    %c0_6 = arith.constant 0 : index
    %c0_7 = arith.constant 0 : index
    %9 = vector.load %arg5[%c0_6, %c0_7] : memref<1x48xf32, #tpu.memory_space<vmem>>, vector<1x48xf32>
    %10 = arith.mulf %0, %0 : vector<128x48xf32>
    %cst_8 = arith.constant dense<0.000000e+00> : vector<48xf32>
    %11 = vector.multi_reduction <add>, %10, %cst_8 [0] : vector<128x48xf32> to vector<48xf32>
    %12 = vector.shape_cast %11 : vector<48xf32> to vector<1x48xf32>
    %13 = arith.addf %9, %12 : vector<1x48xf32>
    %c0_9 = arith.constant 0 : index
    %c0_10 = arith.constant 0 : index
    %14 = vector.load %arg5[%c0_9, %c0_10] : memref<1x48xf32, #tpu.memory_space<vmem>>, vector<1x48xf32>
    tpu.vector_store %arg5[%c0_9, %c0_10], %13 {strides = array<i32>} : memref<1x48xf32, #tpu.memory_space<vmem>>, vector<1x48xf32>,
    %c3_i32 = arith.constant 3 : i32
    %15 = arith.cmpi eq, %arg0, %c3_i32 : i32
    %16 = arith.extui %15 : i1 to i32
    %c0_i32_11 = arith.constant 0 : i32
    %17 = arith.cmpi ne, %16, %c0_i32_11 : i32
    scf.if %17 {
      %c0_12 = arith.constant 0 : index
      %c0_13 = arith.constant 0 : index
      %18 = vector.load %arg4[%c0_12, %c0_13] : memref<1x48xf32, #tpu.memory_space<vmem>>, vector<1x48xf32>
      %cst_14 = arith.constant 2.000000e-03 : f32
      %19 = vector.broadcast %cst_14 : f32 to vector<1x48xf32>
      %20 = arith.mulf %18, %19 : vector<1x48xf32>
      %c0_15 = arith.constant 0 : index
      %c0_16 = arith.constant 0 : index
      %21 = vector.load %arg5[%c0_15, %c0_16] : memref<1x48xf32, #tpu.memory_space<vmem>>, vector<1x48xf32>
      %cst_17 = arith.constant 2.000000e-03 : f32
      %22 = vector.broadcast %cst_17 : f32 to vector<1x48xf32>
      %23 = arith.mulf %21, %22 : vector<1x48xf32>
      %24 = arith.mulf %20, %20 : vector<1x48xf32>
      %25 = arith.subf %23, %24 : vector<1x48xf32>
      %cst_18 = arith.constant 0.000000e+00 : f32
      %26 = vector.broadcast %cst_18 : f32 to vector<1x48xf32>
      %27 = arith.maximumf %25, %26 : vector<1x48xf32>
      %c0_19 = arith.constant 0 : index
      %c0_20 = arith.constant 0 : index
      %28 = vector.load %arg2[%c0_19, %c0_20] : memref<1x48xf32, #tpu.memory_space<vmem>>, vector<1x48xf32>
      %cst_21 = arith.constant 9.99999974E-6 : f32
      %29 = vector.broadcast %cst_21 : f32 to vector<1x48xf32>
      %30 = arith.addf %27, %29 : vector<1x48xf32>
      %31 = math.rsqrt %30 : vector<1x48xf32>
      %32 = arith.mulf %28, %31 : vector<1x48xf32>
      %c0_22 = arith.constant 0 : index
      %c0_23 = arith.constant 0 : index
      %33 = vector.load %arg4[%c0_22, %c0_23] : memref<1x48xf32, #tpu.memory_space<vmem>>, vector<1x48xf32>
      tpu.vector_store %arg4[%c0_22, %c0_23], %20 {strides = array<i32>} : memref<1x48xf32, #tpu.memory_space<vmem>>, vector<1x48xf32>,
      %c0_24 = arith.constant 0 : index
      %c0_25 = arith.constant 0 : index
      %34 = vector.load %arg5[%c0_24, %c0_25] : memref<1x48xf32, #tpu.memory_space<vmem>>, vector<1x48xf32>
      tpu.vector_store %arg5[%c0_24, %c0_25], %27 {strides = array<i32>} : memref<1x48xf32, #tpu.memory_space<vmem>>, vector<1x48xf32>,
      %c0_26 = arith.constant 0 : index
      %c0_27 = arith.constant 0 : index
      %35 = vector.load %arg6[%c0_26, %c0_27] : memref<1x48xf32, #tpu.memory_space<vmem>>, vector<1x48xf32>
      tpu.vector_store %arg6[%c0_26, %c0_27], %32 {strides = array<i32>} : memref<1x48xf32, #tpu.memory_space<vmem>>, vector<1x48xf32>,
      %c0_28 = arith.constant 0 : index
      %c0_29 = arith.constant 0 : index
      %36 = vector.load %arg3[%c0_28, %c0_29] : memref<1x48xf32, #tpu.memory_space<vmem>>, vector<1x48xf32>
      %37 = arith.mulf %20, %32 : vector<1x48xf32>
      %38 = arith.subf %36, %37 : vector<1x48xf32>
      %c0_30 = arith.constant 0 : index
      %c0_31 = arith.constant 0 : index
      %39 = vector.load %arg7[%c0_30, %c0_31] : memref<1x48xf32, #tpu.memory_space<vmem>>, vector<1x48xf32>
      tpu.vector_store %arg7[%c0_30, %c0_31], %38 {strides = array<i32>} : memref<1x48xf32, #tpu.memory_space<vmem>>, vector<1x48xf32>,
    } else {
    }
    return
  }
  func.func @transform_0(%arg0: i32) -> (i32, i32) {
    %c0_i32 = arith.constant 0 : i32
    %c0_i32_0 = arith.constant 0 : i32
    return %arg0, %c0_i32 : i32, i32
  }
  func.func @transform_1(%arg0: i32) -> (i32, i32) {
    %c0_i32 = arith.constant 0 : i32
    %c0_i32_0 = arith.constant 0 : i32
    %c0_i32_1 = arith.constant 0 : i32
    return %c0_i32, %c0_i32_0 : i32, i32
  }
  func.func @transform_2(%arg0: i32) -> (i32, i32) {
    %c0_i32 = arith.constant 0 : i32
    %c0_i32_0 = arith.constant 0 : i32
    %c0_i32_1 = arith.constant 0 : i32
    return %c0_i32, %c0_i32_0 : i32, i32
  }
  func.func @transform_3(%arg0: i32) -> (i32, i32) {
    %c0_i32 = arith.constant 0 : i32
    %c0_i32_0 = arith.constant 0 : i32
    %c0_i32_1 = arith.constant 0 : i32
    return %c0_i32, %c0_i32_0 : i32, i32
  }
  func.func @transform_4(%arg0: i32) -> (i32, i32) {
    %c0_i32 = arith.constant 0 : i32
    %c0_i32_0 = arith.constant 0 : i32
    %c0_i32_1 = arith.constant 0 : i32
    return %c0_i32, %c0_i32_0 : i32, i32
  }
  func.func @transform_5(%arg0: i32) -> (i32, i32) {
    %c0_i32 = arith.constant 0 : i32
    %c0_i32_0 = arith.constant 0 : i32
    %c0_i32_1 = arith.constant 0 : i32
    return %c0_i32, %c0_i32_0 : i32, i32
  }
  func.func @transform_6(%arg0: i32) -> (i32, i32) {
    %c0_i32 = arith.constant 0 : i32
    %c0_i32_0 = arith.constant 0 : i32
    %c0_i32_1 = arith.constant 0 : i32
    return %c0_i32, %c0_i32_0 : i32, i32
  }
}

</mosaic_0001>

<bundles_post_ra>
// kernel: tpu_custom_call.1
= control target key start
LH: loop header
LB: loop body
LE: loop exit
PB: predicated region body
PF: predicated region fallthrough
CT: control target
= control target key end

     0   :  { %12 = vsyncpa [#allocation3], 0  ;;  %s882_s0 = inlined_call_operand.vmem [shape: f32[512,48], index: 0, kind: input, shape index: {}]   ;;  %s883_s1 = inlined_call_operand.vmem [shape: f32[1,48], index: 1, kind: input, shape index: {}]   ;;  %s884_s2 = inlined_call_operand.vmem [shape: f32[1,48], index: 2, kind: input, shape index: {}]   ;;  %s885_s3 = inlined_call_operand.hbm [shape: f32[1,48], index: 3, kind: output, shape index: {0}]   ;;  %s886_s4 = inlined_call_operand.hbm [shape: f32[1,48], index: 4, kind: output, shape index: {1}]   ;;  %s887_s5 = inlined_call_operand.hbm [shape: f32[1,48], index: 5, kind: output, shape index: {2}]   ;;  %s888_s6 = inlined_call_operand.hbm [shape: f32[1,48], index: 6, kind: output, shape index: {3}]  }
   0x1   :  { %13 = vsyncpa [#allocation5], 0 }
   0x2   :  { %14 = vsyncpa [#allocation8], 0  ;;  %s709_s21 = smov 0  }
   0x3 LB: > { %s715_s22 = sadd.s32 4294967295, %s667_s21   ;;  %p491_p0 = scmp.ge.s32.totalorder %s667_s21, 1  ;;  %s667_s21 = sphi %s709_s21, %s20_s21  }
   0x4   : > { %p203_p1 = scmp.lt.s32.totalorder %s667_s21, 5 }
   0x6   : > { %p204_p2 = pnand %p491_p0, %p203_p1 }
   0x7   : > { %s492_s23 = sshll.u32 (!%p204_p2), %s715_s22, 4  ;;  %p494_p4 = scmp.ne.s32.totalorder (!%p204_p2), %s715_s22, 0 }
   0x8   : > { %207 = sbr.rel (%p204_p2) target bundleno = 200 (0xc8), region = 32  ;;  %p229_p3 = scmp.lt.s32.totalorder (!%p204_p2), %s492_s23, 63 }
   0xf   : > { %s890_s23 = smov (!%p229_p3, %s492_s23), 63  ;;  %vm254_vm0 = vcmask (!%p494_p4), 385024   ;;  %v669_v16 = vmov (!%p494_p4), 0.0  }
  0x10   : > { %s493_s24 = sshll.u32 %s890_s23, 3  ;;  %255 = vst.msk [vmem:[#allocation2] sm:$0x1] (!%p494_p4), %vm254_vm0, %v669_v16  ;;  %256 = vst.msk [vmem:[#allocation4] sm:$0x1] (!%p494_p4), %vm254_vm0, %v669_v16 }
  0x11   : > { %s232_s27 = scalar_lea.vmem %s882_s0, %s493_s24  ;;  %253 = sbr.rel (%p494_p4) target bundleno = 24 (0x18), region = 36 }
  0x12   : > { %v234_v0 = vld [vmem:[%s232_s27] sm:$0xff]  ;;  %v235_v1 = vld [vmem:[%s232_s27 + $0x8] sm:$0xff]  ;;  %v236_v2 = vld [vmem:[%s232_s27 + $0x10] sm:$0xff] }
  0x13   : > { %v237_v3 = vld [vmem:[%s232_s27 + $0x18] sm:$0xff]  ;;  %v238_v4 = vld [vmem:[%s232_s27 + $0x20] sm:$0xff]  ;;  %v239_v5 = vld [vmem:[%s232_s27 + $0x28] sm:$0xff] }
  0x14   : > { %v240_v6 = vld [vmem:[%s232_s27 + $0x30] sm:$0xff]  ;;  %v241_v7 = vld [vmem:[%s232_s27 + $0x38] sm:$0xff]  ;;  %v242_v8 = vld [vmem:[%s232_s27 + $0x40] sm:$0xff] }
  0x15   : > { %v243_v9 = vld [vmem:[%s232_s27 + $0x48] sm:$0xff]  ;;  %v244_v10 = vld [vmem:[%s232_s27 + $0x50] sm:$0xff]  ;;  %v723_v11 = vld [vmem:[%s232_s27 + $0x58] sm:$0xff] }
  0x16   : > { %v725_v12 = vld [vmem:[%s232_s27 + $0x60] sm:$0xff]  ;;  %v727_v13 = vld [vmem:[%s232_s27 + $0x68] sm:$0xff]  ;;  %v729_v14 = vld [vmem:[%s232_s27 + $0x70] sm:$0xff] }
  0x17   : > { %v731_v15 = vld [vmem:[%s232_s27 + $0x78] sm:$0xff] }
  0x18 PF: > { %vm258_vm1 = vcmask 392192   ;;  %v300_v24 = vmul.f32 %v234_v0, %v234_v0  ;;  %v301_v25 = vmul.f32 %v235_v1, %v235_v1  ;;  %v302_v27 = vmul.f32 %v236_v2, %v236_v2  ;;  %p495_p5 = scmp.ne.s32.totalorder %s715_s22, 3 }
  0x19   : > { %v259_v17 = vsel %vm258_vm1, %v234_v0, 0.0  ;;  %v260_v18 = vsel %vm258_vm1, %v235_v1, 0.0  ;;  %v262_v19 = vsel %vm258_vm1, %v236_v2, 0.0  ;;  %v264_v21 = vsel %vm258_vm1, %v237_v3, 0.0 }
  0x1a   : > { %v261_v20 = vadd.f32 %v260_v18, %v259_v17  ;;  %v266_v23 = vsel %vm258_vm1, %v238_v4, 0.0  ;;  %v268_v28 = vsel %vm258_vm1, %v239_v5, 0.0  ;;  %v303_v29 = vmul.f32 %v237_v3, %v237_v3 }
  0x1b   : > { %v270_v31 = vsel %vm258_vm1, %v240_v6, 0.0  ;;  %v304_v32 = vmul.f32 %v238_v4, %v238_v4  ;;  %v316_v33 = vsel %vm258_vm1, %v300_v24, 0.0  ;;  %v317_v34 = vsel %vm258_vm1, %v301_v25, 0.0 }
  0x1c   : > { %v263_v22 = vadd.f32 %v262_v19, %v261_v20  ;;  %v318_v36 = vadd.f32 %v317_v34, %v316_v33  ;;  %v319_v37 = vsel %vm258_vm1, %v302_v27, 0.0  ;;  %v272_v38 = vsel %vm258_vm1, %v241_v7, 0.0 }
  0x1d   : > { %v305_v39 = vmul.f32 %v239_v5, %v239_v5  ;;  %v321_v40 = vsel %vm258_vm1, %v303_v29, 0.0  ;;  %v274_v43 = vsel %vm258_vm1, %v242_v8, 0.0  ;;  %v306_v44 = vmul.f32 %v240_v6, %v240_v6 }
  0x1e   : > { %v265_v26 = vadd.f32 %v264_v21, %v263_v22  ;;  %v320_v42 = vadd.f32 %v319_v37, %v318_v36  ;;  %v323_v45 = vsel %vm258_vm1, %v304_v32, 0.0  ;;  %v276_v48 = vsel %vm258_vm1, %v243_v9, 0.0 }
  0x1f   : > { %v307_v49 = vmul.f32 %v241_v7, %v241_v7  ;;  %v325_v50 = vsel %vm258_vm1, %v305_v39, 0.0  ;;  %v278_v53 = vsel %vm258_vm1, %v244_v10, 0.0  ;;  %v308_v54 = vmul.f32 %v242_v8, %v242_v8 }
  0x20   : > { %v267_v30 = vadd.f32 %v266_v23, %v265_v26  ;;  %v322_v47 = vadd.f32 %v321_v40, %v320_v42  ;;  %v327_v55 = vsel %vm258_vm1, %v306_v44, 0.0  ;;  %v280_v58 = vsel %vm258_vm1, %v723_v11, 0.0  ;;  %v299_v44 = vld [vmem:[#allocation4] sm:$0x1] }
  0x21   : > { %v309_v59 = vmul.f32 %v243_v9, %v243_v9  ;;  %v329_v60 = vsel %vm258_vm1, %v307_v49, 0.0  ;;  %v282_v63 = vsel %vm258_vm1, %v725_v12, 0.0  ;;  %v310_v0 = vmul.f32 %v244_v10, %v244_v10 }
  0x22   : > { %v269_v35 = vadd.f32 %v268_v28, %v267_v30  ;;  %v324_v52 = vadd.f32 %v323_v45, %v322_v47  ;;  %v331_v1 = vsel %vm258_vm1, %v308_v54, 0.0  ;;  %v284_v4 = vsel %vm258_vm1, %v727_v13, 0.0 }
  0x23   : > { %v311_v5 = vmul.f32 %v723_v11, %v723_v11  ;;  %v333_v6 = vsel %vm258_vm1, %v309_v59, 0.0  ;;  %v286_v9 = vsel %vm258_vm1, %v729_v14, 0.0  ;;  %v312_v10 = vmul.f32 %v725_v12, %v725_v12 }
  0x24   : > { %v271_v41 = vadd.f32 %v270_v31, %v269_v35  ;;  %v326_v57 = vadd.f32 %v325_v50, %v324_v52  ;;  %v335_v16 = vsel %vm258_vm1, %v310_v0, 0.0  ;;  %v288_v19 = vsel %vm258_vm1, %v731_v15, 0.0 }
  0x25   : > { %v313_v11 = vmul.f32 %v727_v13, %v727_v13  ;;  %v337_v20 = vsel %vm258_vm1, %v311_v5, 0.0  ;;  %v314_v23 = vmul.f32 %v729_v14, %v729_v14  ;;  %v339_v24 = vsel %vm258_vm1, %v312_v10, 0.0 }
  0x26   : > { %v273_v46 = vadd.f32 %v272_v38, %v271_v41  ;;  %v328_v62 = vadd.f32 %v327_v55, %v326_v57  ;;  %v315_v26 = vmul.f32 %v731_v15, %v731_v15  ;;  %v257_v38 = vld [vmem:[#allocation2] sm:$0x1]  ;;  %vm297_vm2 = vcmask 385024  }
  0x27   : > { %v341_v27 = vsel %vm258_vm1, %v313_v11, 0.0  ;;  %v343_v13 = vsel %vm258_vm1, %v314_v23, 0.0  ;;  %v366_v55 = vld [vmem:[%s883_s1] sm:$0x1] (!%p495_p5) }
  0x28   : > { %v275_v51 = vadd.f32 %v274_v43, %v273_v46  ;;  %v330_v3 = vadd.f32 %v329_v60, %v328_v62  ;;  %v345_v32 = vsel %vm258_vm1, %v315_v26, 0.0 }
  0x2a   : > { %v277_v56 = vadd.f32 %v276_v48, %v275_v51  ;;  %v332_v8 = vadd.f32 %v331_v1, %v330_v3 }
  0x2c   : > { %v279_v61 = vadd.f32 %v278_v53, %v277_v56  ;;  %v334_v18 = vadd.f32 %v333_v6, %v332_v8 }
  0x2e   : > { %v281_v2 = vadd.f32 %v280_v58, %v279_v61  ;;  %v336_v22 = vadd.f32 %v335_v16, %v334_v18  ;;  %v373_v58 = vld [vmem:[%s884_s2] sm:$0x1] (!%p495_p5) }
  0x30   : > { %v283_v7 = vadd.f32 %v282_v63, %v281_v2  ;;  %v338_v25 = vadd.f32 %v337_v20, %v336_v22 }
  0x32   : > { %v285_v17 = vadd.f32 %v284_v4, %v283_v7  ;;  %v340_v29 = vadd.f32 %v339_v24, %v338_v25 }
  0x34   : > { %v287_v21 = vadd.f32 %v286_v9, %v285_v17  ;;  %v342_v31 = vadd.f32 %v341_v27, %v340_v29 }
  0x36   : > { %v289_v12 = vadd.f32 %v288_v19, %v287_v21  ;;  %v344_v34 = vadd.f32 %v343_v13, %v342_v31 }
  0x38   : > { %v290_v28 = vrot.slane %v289_v12, 4  ;;  %v346_v35 = vadd.f32 %v345_v32, %v344_v34 }
  0x3a   : > { %v291_v30 = vadd.f32 %v290_v28, %v289_v12  ;;  %v347_v37 = vrot.slane %v346_v35, 4 }
  0x3c   : > { %v292_v33 = vrot.slane %v291_v30, 2  ;;  %v348_v40 = vadd.f32 %v347_v37, %v346_v35 }
  0x3e   : > { %v293_v14 = vadd.f32 %v292_v33, %v291_v30  ;;  %v349_v41 = vrot.slane %v348_v40, 2 }
  0x40   : > { %v294_v36 = vrot.slane %v293_v14, 1  ;;  %v350_v42 = vadd.f32 %v349_v41, %v348_v40 }
  0x42   : > { %v295_v39 = vadd.f32 %v294_v36, %v293_v14  ;;  %v351_v43 = vrot.slane %v350_v42, 1  ;;  %358 = sbr.rel (%p495_p5) target bundleno = 106 (0x6a), region = 40 }
  0x44   : > { %v296_v15 = vadd.f32 %v295_v39, %v257_v38  ;;  %v352_v45 = vadd.f32 %v351_v43, %v350_v42 }
  0x46   : > { %298 = vst.msk [vmem:[#allocation2] sm:$0x1] %vm297_vm2, %v296_v15  ;;  %v353_v46 = vadd.f32 %v352_v45, %v299_v44 }
  0x48   : > { %354 = vst.msk [vmem:[#allocation4] sm:$0x1] %vm297_vm2, %v353_v46 }
  0x4d   : > { %v359_v47 = vld [vmem:[#allocation2] sm:$0x1] }
  0x4e   : > { %v360_v49 = vmul.f32 0.002, %v359_v47 }
  0x4f   : > { %v361_v48 = vld [vmem:[#allocation4] sm:$0x1] }
  0x50   : > { %v362_v50 = vmul.f32 0.002, %v361_v48  ;;  %370 = vst.msk [vmem:[#allocation2] sm:$0x1] %vm297_vm2, %v360_v49  ;;  %v363_v51 = vmul.f32 %v360_v49, %v360_v49 }
  0x52   : > { %v364_v52 = vsub.f32 %v362_v50, %v363_v51 }
  0x54   : > { %v365_v53 = vmax.f32 %v364_v52, 0.0 }
  0x56   : > { %v367_v54 = vadd.f32 1e-05, %v365_v53  ;;  %371 = vst.msk [vmem:[#allocation4] sm:$0x1] %vm297_vm2, %v365_v53 }
  0x58   : > { %543 = vrsqrt.f32 %v367_v54 }
  0x62   : > { %v544_v56 = vpop.eup %543 }
  0x63   : > { %v369_v57 = vmul.f32 %v544_v56, %v366_v55 }
  0x65   : > { %372 = vst.msk [vmem:[#allocation6] sm:$0x1] %vm297_vm2, %v369_v57  ;;  %v374_v59 = vmul.f32 %v369_v57, %v360_v49 }
  0x67   : > { %v375_v60 = vsub.f32 %v373_v58, %v374_v59 }
  0x69   : > { %376 = vst.msk [vmem:[#allocation7] sm:$0x1] %vm297_vm2, %v375_v60 }
  0x6a PF: > { %p522_p6 = scmp.eq.s32.totalorder %s715_s22, 3  ;;  %s670_s8 = smov [#allocation4]  }
  0x6b   : > { %s395_s9 = sshll.u32 %s670_s8, 4  ;;  %s671_s10 = smov [#allocation2]   ;;  %s396_s9 = int_to_ptr.vmem [resolvable:$true] %s395_s9 }
  0x6c   : > { %s384_s11 = sshll.u32 %s671_s10, 4  ;;  %s545_s12 = scalar_lea.vmem %s396_s9, 16  ;;  %s385_s11 = int_to_ptr.vmem [resolvable:$true] %s384_s11 }
  0x6d   : > { %p546_p7 = scmp.ne.s32.totalorder %s396_s9, %s545_s12  ;;  %s551_s13 = scalar_lea.vmem %s396_s9, 32 }
  0x6e   : > { %p552_p10 = scmp.lt.s32.totalorder %s396_s9, %s396_s9  ;;  %p553_p11 = scmp.lt.s32.totalorder %s551_s13, %s545_s12 }
  0x6f   : > { %p547_p8 = pnand %p546_p7, %p522_p6 }
  0x70   : > { %p554_p12 = por %p553_p11, %p552_p10 }
  0x71   : > { %p548_p9 = pneg %p547_p8 }
  0x73   : > { %p555_p13 = pnand %p554_p12, %p548_p9 }
  0x75   : > { %558 = shalt.err (!%p555_p13)
}
  0x76   : > { %s559_s16 = scalar_lea.hbm %s886_s4, 16 }
  0x77   : > { %p560_p0 = scmp.ne.s32.totalorder %s886_s4, %s559_s16  ;;  %p565_p3 = scmp.lt.u32.totalorder %s559_s16, %s886_s4 }
  0x79   : > { %p561_p1 = pnand %p560_p0, %p522_p6 }
  0x7b   : > { %p562_p2 = pneg %p561_p1 }
  0x7d   : > { %p567_p4 = pnand %p565_p3, %p562_p2 }
  0x7f   : > { %570 = shalt.err (!%p567_p4)
}
  0x80   : > { %509 = dma.vmem_to_hbm [thread:$0]  (%p522_p6), %s396_s9, 16, %s886_s4, [#allocation5]  }
  0x81   : > { %s571_s25 = scalar_lea.vmem %s385_s11, 16  ;;  %s577_s26 = scalar_lea.vmem %s385_s11, 32 }
  0x82   : > { %p572_p5 = scmp.ne.s32.totalorder %s385_s11, %s571_s25  ;;  %p578_p9 = scmp.lt.s32.totalorder %s385_s11, %s385_s11 }
  0x83   : > { %p579_p10 = scmp.lt.s32.totalorder %s577_s26, %s571_s25 }
  0x84   : > { %p573_p7 = pnand %p572_p5, %p522_p6 }
  0x85   : > { %p580_p11 = por %p579_p10, %p578_p9 }
  0x86   : > { %p574_p8 = pneg %p573_p7 }
  0x88   : > { %p581_p12 = pnand %p580_p11, %p574_p8 }
  0x8a   : > { %584 = shalt.err (!%p581_p12)
}
  0x8b   : > { %s585_s29 = scalar_lea.hbm %s885_s3, 16 }
  0x8c   : > { %p586_p13 = scmp.ne.s32.totalorder %s885_s3, %s585_s29  ;;  %p591_p2 = scmp.lt.u32.totalorder %s585_s29, %s885_s3 }
  0x8e   : > { %p587_p0 = pnand %p586_p13, %p522_p6 }
  0x90   : > { %p588_p1 = pneg %p587_p0 }
  0x92   : > { %p593_p3 = pnand %p591_p2, %p588_p1 }
  0x94   : > { %596 = shalt.err (!%p593_p3)
}
  0x95   : > { %507 = dma.vmem_to_hbm [thread:$0]  (%p522_p6), %s385_s11, 16, %s885_s3, [#allocation3]  }
  0x96   : > { %s672_s13 = smov [#allocation6]   ;;  %s673_s15 = smov [#allocation7]  }
  0x97   : > { %s406_s14 = sshll.u32 %s672_s13, 4  ;;  %s417_s16 = sshll.u32 %s673_s15, 4  ;;  %s407_s14 = int_to_ptr.vmem [resolvable:$true] %s406_s14  ;;  %s418_s16 = int_to_ptr.vmem [resolvable:$true] %s417_s16 }
  0x98   : > { %s597_s17 = scalar_lea.vmem %s407_s14, 16  ;;  %s603_s18 = scalar_lea.vmem %s407_s14, 32 }
  0x99   : > { %p598_p4 = scmp.ne.s32.totalorder %s407_s14, %s597_s17  ;;  %p604_p8 = scmp.lt.s32.totalorder %s407_s14, %s407_s14 }
  0x9a   : > { %p605_p9 = scmp.lt.s32.totalorder %s603_s18, %s597_s17 }
  0x9b   : > { %p599_p5 = pnand %p598_p4, %p522_p6 }
  0x9c   : > { %p606_p10 = por %p605_p9, %p604_p8 }
  0x9d   : > { %p600_p7 = pneg %p599_p5 }
  0x9f   : > { %p607_p11 = pnand %p606_p10, %p600_p7 }
  0xa1   : > { %610 = shalt.err (!%p607_p11)
}
  0xa2   : > { %s611_s11 = scalar_lea.hbm %s887_s5, 16 }
  0xa3   : > { %p612_p12 = scmp.ne.s32.totalorder %s887_s5, %s611_s11  ;;  %p617_p1 = scmp.lt.u32.totalorder %s611_s11, %s887_s5 }
  0xa5   : > { %p613_p13 = pnand %p612_p12, %p522_p6 }
  0xa7   : > { %p614_p0 = pneg %p613_p13 }
  0xa9   : > { %p619_p2 = pnand %p617_p1, %p614_p0 }
  0xab   : > { %622 = shalt.err (!%p619_p2)
}
  0xac   : > { %511 = dma.vmem_to_hbm [thread:$0]  (%p522_p6), %s407_s14, 16, %s887_s5, [#allocation5]  }
  0xad   : > { %s623_s29 = scalar_lea.vmem %s418_s16, 16  ;;  %s629_s30 = scalar_lea.vmem %s418_s16, 32 }
  0xae   : > { %p624_p3 = scmp.ne.s32.totalorder %s418_s16, %s623_s29  ;;  %p630_p7 = scmp.lt.s32.totalorder %s418_s16, %s418_s16 }
  0xaf   : > { %p631_p8 = scmp.lt.s32.totalorder %s629_s30, %s623_s29 }
  0xb0   : > { %p625_p4 = pnand %p624_p3, %p522_p6 }
  0xb1   : > { %p632_p9 = por %p631_p8, %p630_p7 }
  0xb2   : > { %p626_p5 = pneg %p625_p4 }
  0xb4   : > { %p633_p10 = pnand %p632_p9, %p626_p5 }
  0xb6   : > { %636 = shalt.err (!%p633_p10)
}
  0xb7   : > { %s637_s9 = scalar_lea.hbm %s888_s6, 16 }
  0xb8   : > { %p638_p11 = scmp.ne.s32.totalorder %s888_s6, %s637_s9  ;;  %p643_p0 = scmp.lt.u32.totalorder %s637_s9, %s888_s6 }
  0xba   : > { %p639_p12 = pnand %p638_p11, %p522_p6 }
  0xbc   : > { %p640_p13 = pneg %p639_p12 }
  0xbe   : > { %p645_p1 = pnand %p643_p0, %p640_p13 }
  0xc0   : > { %648 = shalt.err (!%p645_p1)
}
  0xc1   : > { %513 = dma.vmem_to_hbm [thread:$0]  (%p522_p6), %s418_s16, 16, %s888_s6, [#allocation8]  }
  0xc2   : > { %654 = dma.done.wait (%p522_p6), [#allocation3], 16  }
  0xc3   : > { %656 = vsyncadd (%p522_p6), [#allocation3], 4294967280 }
  0xc4   : > { %658 = dma.done.wait (%p522_p6), [#allocation5], 32  }
  0xc5   : > { %660 = vsyncadd (%p522_p6), [#allocation5], 4294967264 }
  0xc6   : > { %662 = dma.done.wait (%p522_p6), [#allocation8], 16  }
  0xc7   : > { %664 = vsyncadd (%p522_p6), [#allocation8], 4294967280 }
  0xc8 PF: > { %s20_s21 = sadd.s32 1, %s667_s21  }
  0xc9   : > { %p17_p2 = scmp.ge.s32.totalorder %s20_s21, 6  }
  0xcb   :  { %19 = sbr.rel (!%p17_p2) target bundleno = 3 (0x3), region = 91 }
  0xd2   :  { %442 = vsyncpa [#allocation3], 1 }
  0xd3   :  { %444 = vsyncpa [#allocation3 + $0x1], 1 }
  0xd4   :  { %445 = vsyncpa [#allocation5], 1 }
  0xd5   :  { %446 = vsyncpa [#allocation8], 1 }

</bundles_post_ra>
